<compile_context>
chip_gen: v6e
topology: v6e:2x2x1
jax: 0.10.0
libtpu: 0.0.40
codegen_flags: <defaults>
</compile_context>

<pallas_src>
import jax
import jax.numpy as jnp
from jax.experimental import pallas as pl
from jax.experimental.pallas import tpu as pltpu


# ---------------------------------------------------------------------------
# Kernel
# ---------------------------------------------------------------------------
def mlp_kernel(x_ref, w1_ref, w2_ref, w3_ref, o_ref):
    # Shapes (tb = batch tile on the lane axis):
    #   x_ref  (Kin, tb)        stacked [input; condition; ones]
    #   w1_ref (H1+1, Kin)      [[w1 | b1], [0 ... 0 | 1]]   -> keeps a ones row alive
    #   w2_ref (H2+1, H1+1)     [[w2 | b2], [0 ... 0 | 1]]   -> keeps a ones row alive
    #   w3_ref (H2+1, 1)        [w3 ; b3]
    #   o_ref  (1, tb)
    #
    # Layer 0 (+ fused concat + fused bias) on the MXU; batch is the wide lane dim.
    h = jnp.dot(w1_ref[...], x_ref[...], preferred_element_type=jnp.float32)
    h = jnp.maximum(h, 0.0)                               # relu; row H1 stays == 1
    # Dropout -> identity in eval mode; relu(relu(x)) collapsed.
    # TODO(synk): training-mode dropout (stochastic mask via pltpu.prng_random_bits) not implemented.

    # Layer 1 (+ fused bias) on the MXU.
    h = jnp.dot(w2_ref[...], h, preferred_element_type=jnp.float32)
    h = jnp.maximum(h, 0.0)                               # relu; row H2 stays == 1

    # Output layer Linear(16, 1) + b3: N=1 on the MXU would be pure padding, so do a
    # broadcast multiply + sublane reduction (b3 is row H2 of w3_ref, paired with the
    # ones row of h).  Exact sigmoid (EUP exp + divide) — negligible cost here.
    z = jnp.sum(w3_ref[...] * h, axis=0, keepdims=True)   # (1, tb)
    o_ref[...] = (1.0 / (1.0 + jnp.exp(-z))).astype(o_ref.dtype)


# ---------------------------------------------------------------------------
# Wrapper
# ---------------------------------------------------------------------------
def _choose_tb(B, tb_max=32768):
    """Batch tile: whole batch for modest B; for large B a big lane-dense tile,
    capped so the grid has >= 2 steps (keeps both v7x TensorCores busy)."""
    if B <= 2048:
        return B                                  # single tile (block == full array dim)
    half = -(-B // 2)                             # ceil(B / 2) -> at least 2 grid steps
    tb = min(tb_max, half)
    return max(128, (tb // 128) * 128)            # lane-dense multiple of 128


def simple_net_forward(inp, cond, packed_params, *, tb_max=32768):
    """inp: (B, input_dim), cond: (B, cond_input) -> (B, 1) sigmoid outputs."""
    B, input_dim = inp.shape
    _, cond_input = cond.shape
    w1_aug, w2_aug, w3_aug = packed_params
    Kin = input_dim + cond_input + 1              # +1 for the bias-folding ones row
    assert w1_aug.shape[1] == Kin, "packed params do not match input/cond dims"
    dout = w3_aug.shape[1]
    assert dout == 1, "kernel is specialized to output_dim == 1 (module default)"

    # Lane-dense layout: batch on the last axis; ones row folds all biases into the MXU.
    ones = jnp.ones((1, B), jnp.float32)
    x_aug = jnp.concatenate(
        [inp.T.astype(jnp.float32), cond.T.astype(jnp.float32), ones], axis=0
    )                                             # (Kin, B)

    tb = _choose_tb(B, tb_max)
    n_tiles = pl.cdiv(B, tb)
    b_pad = n_tiles * tb
    if b_pad != B:
        # Zero-pad the tail tile so padded lanes compute finite values (no NaN/inf in
        # temporaries); the pad lanes are sliced off below.
        x_aug = jnp.pad(x_aug, ((0, 0), (0, b_pad - B)))

    resident = lambda a: pl.BlockSpec(a.shape, lambda i: (0, 0))  # weights stay in VMEM

    out_t = pl.pallas_call(
        mlp_kernel,
        out_shape=jax.ShapeDtypeStruct((dout, b_pad), jnp.float32),
        grid=(n_tiles,),
        in_specs=[
            pl.BlockSpec((Kin, tb), lambda i: (0, i)),
            resident(w1_aug),
            resident(w2_aug),
            resident(w3_aug),
        ],
        out_specs=pl.BlockSpec((dout, tb), lambda i: (0, i)),
        compiler_params=pltpu.CompilerParams(
            dimension_semantics=("parallel",),
            vmem_limit_bytes=32 * 1024 * 1024,
        ),
    )(x_aug, w1_aug, w2_aug, w3_aug)

    return out_t[:, :B].T                         # (B, 1)


# ---------------------------------------------------------------------------
# Parameters (mirrors SimpleNet.__init__ sizing / nn.Linear default init range)
# ---------------------------------------------------------------------------
def init_params(key, input_dim=1, cond_input=1, output_dim=1, n_layers=2):
    assert n_layers == 2, "kernel is specialized to the default n_layers == 2"
    total_in = input_dim + cond_input
    hidden = [2 ** (i + 3) for i in range(1, n_layers + 1)][::-1]   # [32, 16]
    dims = [total_in] + hidden + [output_dim]

    def linear(k, fan_in, fan_out):
        kw, kb = jax.random.split(k)
        bound = 1.0 / float(fan_in) ** 0.5
        w = jax.random.uniform(kw, (fan_out, fan_in), jnp.float32, -bound, bound)
        b = jax.random.uniform(kb, (fan_out,), jnp.float32, -bound, bound)
        return w, b

    keys = jax.random.split(key, 3)
    return [linear(keys[i], dims[i], dims[i + 1]) for i in range(3)]


def pack_params(params):
    """Build the bias-folded, transposed-layout weights the kernel consumes."""
    (w1, b1), (w2, b2), (w3, b3) = params
    h1, kin0 = w1.shape                      # (32, 2)
    h2 = w2.shape[0]                         # 16
    assert w3.shape[0] == 1

    # Layer 0: [w1 | b1] plus a row that forwards the ones input row.
    w1_aug = jnp.zeros((h1 + 1, kin0 + 1), jnp.float32)
    w1_aug = w1_aug.at[:h1, :kin0].set(w1).at[:h1, kin0].set(b1).at[h1, kin0].set(1.0)
    # Layer 1: [w2 | b2] plus a row that forwards the ones row again.
    w2_aug = jnp.zeros((h2 + 1, h1 + 1), jnp.float32)
    w2_aug = w2_aug.at[:h2, :h1].set(w2).at[:h2, h1].set(b2).at[h2, h1].set(1.0)
    # Output layer: [w3 ; b3] as a column, consumed by a sublane reduction.
    w3_aug = jnp.concatenate([w3.T, b3.reshape(1, 1)], axis=0)      # (h2 + 1, 1)
    return w1_aug, w2_aug, w3_aug


def _reference_forward(inp, cond, params):
    """Pure-JAX reference of the PyTorch forward (eval mode)."""
    (w1, b1), (w2, b2), (w3, b3) = params
    x = jnp.concatenate([inp, cond], axis=1)
    h = jnp.maximum(x @ w1.T + b1, 0.0)
    h = jnp.maximum(h @ w2.T + b2, 0.0)
    z = h @ w3.T + b3
    return 1.0 / (1.0 + jnp.exp(-z))


if __name__ == "__main__":
    key = jax.random.PRNGKey(0)
    k_data, k_params = jax.random.split(key)
    params = init_params(k_params)
    packed = pack_params(params)

    # Small single-tile case and a multi-tile case with a ragged tail (exercises the
    # >=2-step parallel grid and the zero-padding path).
    for B in (256, 2500):
        ki, kc = jax.random.split(jax.random.fold_in(k_data, B))
        inp = jax.random.normal(ki, (B, 1), jnp.float32)
        cond = jax.random.normal(kc, (B, 1), jnp.float32)

        out = simple_net_forward(inp, cond, packed)
        jax.block_until_ready(out)

        assert out.shape == (B, 1) and out.dtype == jnp.float32
        ref = _reference_forward(inp, cond, params)
        err = float(jnp.max(jnp.abs(out - ref)))
        assert err < 2e-3, f"B={B}: max abs err {err}"

    print("KERNEL_OK")
</pallas_src>

<mosaic_0001>
module attributes {stable_mosaic.version = 11 : i64} {
  func.func @mlp_kernel(%arg0: i32, %arg1: memref<3x256xf32, #tpu.memory_space<vmem>>, %arg2: memref<33x3xf32, #tpu.memory_space<vmem>>, %arg3: memref<17x33xf32, #tpu.memory_space<vmem>>, %arg4: memref<17x1xf32, #tpu.memory_space<vmem>>, %arg5: memref<1x256xf32, #tpu.memory_space<vmem>>) attributes {dimension_semantics = [#tpu.dimension_semantics<parallel>], iteration_bounds = array<i64: 1>, scalar_prefetch = 0 : i64, scratch_operands = 0 : i64, tpu.core_type = #tpu.core_type<tc>, window_params = [{transform_indices = @transform_0, window_bounds = array<i64: 3, 256>}, {pipeline_mode = #tpu.pipeline_mode<synchronous>, transform_indices = @transform_1, window_bounds = array<i64: 33, 3>}, {pipeline_mode = #tpu.pipeline_mode<synchronous>, transform_indices = @transform_2, window_bounds = array<i64: 17, 33>}, {pipeline_mode = #tpu.pipeline_mode<synchronous>, transform_indices = @transform_3, window_bounds = array<i64: 17, 1>}, {transform_indices = @transform_4, window_bounds = array<i64: 1, 256>}]} {
    %c0 = arith.constant 0 : index
    %c0_0 = arith.constant 0 : index
    %0 = vector.load %arg2[%c0, %c0_0] : memref<33x3xf32, #tpu.memory_space<vmem>>, vector<33x3xf32>
    %c0_1 = arith.constant 0 : index
    %c0_2 = arith.constant 0 : index
    %1 = vector.load %arg1[%c0_1, %c0_2] : memref<3x256xf32, #tpu.memory_space<vmem>>, vector<3x256xf32>
    %cst = arith.constant dense<0.000000e+00> : vector<33x256xf32>
    %2 = tpu.matmul %0, %1, %cst {dimension_numbers = #tpu.dot_dimension_numbers<[1], [0], [0], [1], [0, 0, 1, 1], [], []>} : vector<33x3xf32>, vector<3x256xf32>, vector<33x256xf32> -> vector<33x256xf32>
    %cst_3 = arith.constant 0.000000e+00 : f32
    %3 = vector.broadcast %cst_3 : f32 to vector<33x256xf32>
    %4 = arith.maximumf %2, %3 : vector<33x256xf32>
    %c0_4 = arith.constant 0 : index
    %c0_5 = arith.constant 0 : index
    %5 = vector.load %arg3[%c0_4, %c0_5] : memref<17x33xf32, #tpu.memory_space<vmem>>, vector<17x33xf32>
    %cst_6 = arith.constant dense<0.000000e+00> : vector<17x256xf32>
    %6 = tpu.matmul %5, %4, %cst_6 {dimension_numbers = #tpu.dot_dimension_numbers<[1], [0], [0], [1], [0, 0, 1, 1], [], []>} : vector<17x33xf32>, vector<33x256xf32>, vector<17x256xf32> -> vector<17x256xf32>
    %cst_7 = arith.constant 0.000000e+00 : f32
    %7 = vector.broadcast %cst_7 : f32 to vector<17x256xf32>
    %8 = arith.maximumf %6, %7 : vector<17x256xf32>
    %c0_8 = arith.constant 0 : index
    %c0_9 = arith.constant 0 : index
    %9 = vector.load %arg4[%c0_8, %c0_9] : memref<17x1xf32, #tpu.memory_space<vmem>>, vector<17x1xf32>
    %10 = vector.broadcast %9 : vector<17x1xf32> to vector<17x256xf32>
    %11 = arith.mulf %10, %8 : vector<17x256xf32>
    %cst_10 = arith.constant dense<0.000000e+00> : vector<256xf32>
    %12 = vector.multi_reduction <add>, %11, %cst_10 [0] : vector<17x256xf32> to vector<256xf32>
    %13 = vector.shape_cast %12 : vector<256xf32> to vector<1x256xf32>
    %cst_11 = arith.constant 0.000000e+00 : f32
    %14 = vector.broadcast %cst_11 : f32 to vector<1x256xf32>
    %15 = arith.subf %14, %13 : vector<1x256xf32>
    %16 = math.exp %15 : vector<1x256xf32>
    %cst_12 = arith.constant 1.000000e+00 : f32
    %17 = vector.broadcast %cst_12 : f32 to vector<1x256xf32>
    %18 = arith.addf %17, %16 : vector<1x256xf32>
    %cst_13 = arith.constant 1.000000e+00 : f32
    %19 = vector.broadcast %cst_13 : f32 to vector<1x256xf32>
    %20 = arith.divf %19, %18 : vector<1x256xf32>
    %c0_14 = arith.constant 0 : index
    %c0_15 = arith.constant 0 : index
    %21 = vector.load %arg5[%c0_14, %c0_15] : memref<1x256xf32, #tpu.memory_space<vmem>>, vector<1x256xf32>
    tpu.vector_store %arg5[%c0_14, %c0_15], %20 {strides = array<i32>} : memref<1x256xf32, #tpu.memory_space<vmem>>, vector<1x256xf32>,
    return
  }
  func.func @transform_0(%arg0: i32) -> (i32, i32) {
    %c0_i32 = arith.constant 0 : i32
    %c0_i32_0 = arith.constant 0 : i32
    return %c0_i32, %arg0 : i32, i32
  }
  func.func @transform_1(%arg0: i32) -> (i32, i32) {
    %c0_i32 = arith.constant 0 : i32
    %c0_i32_0 = arith.constant 0 : i32
    %c0_i32_1 = arith.constant 0 : i32
    return %c0_i32, %c0_i32_0 : i32, i32
  }
  func.func @transform_2(%arg0: i32) -> (i32, i32) {
    %c0_i32 = arith.constant 0 : i32
    %c0_i32_0 = arith.constant 0 : i32
    %c0_i32_1 = arith.constant 0 : i32
    return %c0_i32, %c0_i32_0 : i32, i32
  }
  func.func @transform_3(%arg0: i32) -> (i32, i32) {
    %c0_i32 = arith.constant 0 : i32
    %c0_i32_0 = arith.constant 0 : i32
    %c0_i32_1 = arith.constant 0 : i32
    return %c0_i32, %c0_i32_0 : i32, i32
  }
  func.func @transform_4(%arg0: i32) -> (i32, i32) {
    %c0_i32 = arith.constant 0 : i32
    %c0_i32_0 = arith.constant 0 : i32
    return %c0_i32, %arg0 : i32, i32
  }
}

</mosaic_0001>

<bundles_post_ra>
// kernel: tpu_custom_call.1
= control target key start
LH: loop header
LB: loop body
LE: loop exit
PB: predicated region body
PF: predicated region fallthrough
CT: control target
= control target key end

     0   :  { %vm42_vm0 = vcmask 1042432   ;;  %v401_v2 = vmov 0.0   ;;  %vm26_vm1 = vcmask 23552   ;;  %s486_s0 = inlined_call_operand.vmem [shape: f32[3,256], index: 0, kind: input, shape index: {}]   ;;  %s487_s1 = inlined_call_operand.vmem [shape: f32[33,3], index: 1, kind: input, shape index: {}]   ;;  %s488_s2 = inlined_call_operand.vmem [shape: f32[17,33], index: 2, kind: input, shape index: {}]   ;;  %s489_s3 = inlined_call_operand.vmem [shape: f32[17,1], index: 3, kind: input, shape index: {}]   ;;  %s490_s4 = inlined_call_operand.hbm [shape: f32[1,256], index: 4, kind: output, shape index: {}]  }
   0x1   :  { %v23_v0 = vld [vmem:[%s486_s0] sm:$0x77]  ;;  %111 = vmatprep.mubr.f32.mxu0 %v401_v2  ;;  %236 = vmatprep.mubr.f32.mxu1 %v401_v2 }
   0x2   :  { %v25_v1 = vcombine.high %v23_v0, %v23_v0  ;;  %v18_v3 = vld [vmem:[%s487_s1] sm:$0xff] }
   0x3   :  { %9 = vsyncpa [#allocation3], 0  ;;  %v19_v4 = vld [vmem:[%s487_s1 + $0x8] sm:$0xff]  ;;  %v20_v5 = vld [vmem:[%s487_s1 + $0x10] sm:$0xff]  ;;  %v402_v10 = vmov 0   ;;  %vm165_vm2 = vcmask 1040384  }
   0x4   :  { %352 = vmatprep.subr.msk.mxu0 %vm42_vm0, %v25_v1  ;;  %v21_v6 = vld [vmem:[%s487_s1 + $0x18] sm:$0xff]  ;;  %v22_v7 = vld [vmem:[%s487_s1 + $0x20] sm:$0x1]  ;;  %v263_v9 = vld [vmem:[%s489_s3 + $0x10] sm:$0x1]  ;;  %368 = vset.pattern.permute.xlu0 %v402_v10  ;;  %vm155_vm3 = vcmask 269312  }
   0x5   :  { %353 = vmatpush1.msk.msra.mxu0 %vm42_vm0, %v23_v0  ;;  %v261_v8 = vld [vmem:[%s489_s3] sm:$0xff]  ;;  %369 = vset.pattern.permute.xlu1 %v402_v10  ;;  %v262_v11 = vld [vmem:[%s489_s3 + $0x8] sm:$0xff]  ;;  %v154_v34 = vld [vmem:[%s488_s2 + $0x10] sm:$0x1] }
   0x6   :  { %354 = vmatmul.mubr.msk.f32.vlgmr.msra.gmra.mxu0 %vm26_vm1, %v18_v3  ;;  %266 = vperm.xlu0 %368, %v261_v8   ;;  %v152_v32 = vld [vmem:[%s488_s2] sm:$0xff]  ;;  %v153_v33 = vld [vmem:[%s488_s2 + $0x8] sm:$0xff]  ;;  %s404_s2 = smov [#allocation2]  }
   0x7   :  { %117 = vmatprep.mubr.f32.mxu0 %v401_v2  ;;  %276 = vperm.xlu1 %369, %v263_v9   ;;  %s344_s10 = sshll.u32 %s404_s2, 4  ;;  %s345_s10 = int_to_ptr.vmem [resolvable:$true] %s344_s10 }
   0x8   :  { %s379_s11 = scalar_lea.vmem %s345_s10, 32  ;;  %p384_p1 = scmp.lt.s32.totalorder %s345_s10, %s345_s10 }
   0x9   :  { %p380_p0 = scmp.ne.s32.totalorder %s345_s10, %s379_s11  ;;  %p385_p2 = scmp.lt.s32.totalorder %s379_s11, %s379_s11 }
   0xa   :  { %355 = vmatmul.mubr.msk.f32.gmra.mxu0 %vm26_vm1, %v19_v4  ;;  %271 = vperm.xlu0 %368, %v262_v11  }
   0xb   :  { %123 = vmatprep.mubr.f32.mxu0 %v401_v2  ;;  %p386_p3 = por %p385_p2, %p384_p1 }
   0xd   :  { %p387_p4 = pnand %p386_p3, %p380_p0 }
   0xe   :  { %356 = vmatmul.mubr.msk.f32.gmra.mxu0 %vm26_vm1, %v20_v5 }
   0xf   :  { %129 = vmatprep.mubr.f32.mxu0 %v401_v2 }
  0x12   :  { %357 = vmatmul.mubr.msk.f32.gmra.mxu0 %vm26_vm1, %v21_v6 }
  0x13   :  { %135 = vmatprep.mubr.f32.mxu0 %v401_v2 }
  0x16   :  { %358 = vmatmul.mubr.msk.f32.gmra.mxu0 %vm26_vm1, %v22_v7 }
  0x81   :  { %v267_v35 = vpop.permute.xlu0 %266 }
  0x82   :  { %v277_v47 = vpop.permute.xlu1 %276 }
  0x85   :  { %v272_v40 = vpop.permute.xlu0 %271 }
  0xc6   :  { %v113_v12 = vpop.f32.mrf.mxu0 }
  0xc7   :  { %v142_v31 = vmax.f32 %v113_v12, 0.0 }
  0xc8   :  { %v115_v13 = vpop.f32.mrf.mxu0 }
  0xc9   :  { %v143_v30 = vmax.f32 %v115_v13, 0.0 }
  0xca   :  { %v119_v14 = vpop.f32.mrf.mxu0 }
  0xcb   :  { %v144_v29 = vmax.f32 %v119_v14, 0.0 }
  0xcc   :  { %v121_v15 = vpop.f32.mrf.mxu0 }
  0xcd   :  { %v145_v28 = vmax.f32 %v121_v15, 0.0 }
  0xce   :  { %v125_v16 = vpop.f32.mrf.mxu0 }
  0xcf   :  { %v146_v27 = vmax.f32 %v125_v16, 0.0 }
  0xd0   :  { %v127_v17 = vpop.f32.mrf.mxu0 }
  0xd1   :  { %v147_v26 = vmax.f32 %v127_v17, 0.0 }
  0xd2   :  { %v131_v18 = vpop.f32.mrf.mxu0 }
  0xd3   :  { %v148_v25 = vmax.f32 %v131_v18, 0.0  ;;  %v403_v18 = vmov 1966171168  }
  0xd4   :  { %v133_v19 = vpop.f32.mrf.mxu0 }
  0xd5   :  { %v149_v24 = vmax.f32 %v133_v19, 0.0  ;;  %v319_v19 = vunpack.c.l.s4 %v403_v18 }
  0xd6   :  { %v137_v20 = vpop.f32.mrf.mxu0 }
  0xd7   :  { %v150_v23 = vmax.f32 %v137_v20, 0.0  ;;  %v321_v20 = vlaneseq }
  0xd8   :  { %v139_v21 = vpop.f32.mrf.mxu0 }
  0xd9   :  { %v151_v22 = vmax.f32 %v139_v21, 0.0  ;;  %v320_v21 = vunpack.c.0.s8 %v319_v19  ;;  %vm335_vm4 = vcmp.lt.s32.totalorder %v321_v20, 256 }
  0xdb   :  { %359 = vmatprep.subr.msk.mxu1 %vm165_vm2, %v151_v22  ;;  %v322_v22 = vshrl.u32 %v321_v20, 7 }
  0xdc   :  { %360 = vmatpush1.msk.msra.mxu1 %vm165_vm2, %v150_v23 }
  0xdd   :  { %196 = vmatprep.subr.mxu1 %v149_v24  ;;  %v323_v24 = vsub.s32 %v320_v21, %v322_v22 }
  0xde   :  { %197 = vmatpush1.msra.mxu1 %v148_v25 }
  0xdf   :  { %198 = vmatprep.subr.mxu1 %v147_v26 }
  0xe0   :  { %199 = vmatpush1.msra.mxu1 %v146_v27 }
  0xe1   :  { %200 = vmatprep.subr.mxu1 %v145_v28 }
  0xe2   :  { %201 = vmatpush1.msra.mxu1 %v144_v29 }
  0xe3   :  { %202 = vmatprep.subr.mxu1 %v143_v30 }
  0xe4   :  { %203 = vmatpush1.msra.mxu1 %v142_v31 }
  0xe5   :  { %361 = vmatmul.mubr.msk.f32.vlgmr.msra.gmra.mxu1 %vm155_vm3, %v152_v32 }
  0xe6   :  { %242 = vmatprep.mubr.f32.mxu1 %v401_v2 }
  0xe9   :  { %362 = vmatmul.mubr.msk.f32.gmra.mxu1 %vm155_vm3, %v153_v33 }
  0xea   :  { %248 = vmatprep.mubr.f32.mxu1 %v401_v2 }
  0xed   :  { %363 = vmatmul.mubr.msk.f32.gmra.mxu1 %vm155_vm3, %v154_v34 }
 0x1a5   :  { %v238_v36 = vpop.f32.mrf.mxu1 }
 0x1a6   :  { %v255_v41 = vmax.f32 %v238_v36, 0.0 }
 0x1a7   :  { %v240_v37 = vpop.f32.mrf.mxu1 }
 0x1a8   :  { %v256_v44 = vmax.f32 %v240_v37, 0.0  ;;  %v279_v49 = vmul.f32 %v267_v35, %v255_v41 }
 0x1a9   :  { %v244_v38 = vpop.f32.mrf.mxu1 }
 0x1aa   :  { %v257_v39 = vmax.f32 %v244_v38, 0.0  ;;  %v280_v54 = vmul.f32 %v267_v35, %v256_v44 }
 0x1ab   :  { %v246_v42 = vpop.f32.mrf.mxu1 }
 0x1ac   :  { %v258_v43 = vmax.f32 %v246_v42, 0.0  ;;  %v281_v45 = vmul.f32 %v272_v40, %v257_v39 }
 0x1ad   :  { %v250_v46 = vpop.f32.mrf.mxu1 }
 0x1ae   :  { %v259_v48 = vmax.f32 %v250_v46, 0.0  ;;  %v282_v50 = vmul.f32 %v272_v40, %v258_v43  ;;  %v285_v55 = vadd.f32 %v281_v45, %v279_v49 }
 0x1af   :  { %v252_v51 = vpop.f32.mrf.mxu1 }
 0x1b0   :  { %v283_v52 = vmul.f32 %v277_v47, %v259_v48  ;;  %v260_v53 = vmax.f32 %v252_v51, 0.0  ;;  %v294_v58 = vadd.f32 %v282_v50, %v280_v54 }
 0x1b2   :  { %v286_v56 = vsel %vm165_vm2, %v283_v52, 0.0  ;;  %v284_v57 = vmul.f32 %v277_v47, %v260_v53 }
 0x1b3   :  { %v287_v59 = vadd.f32 %v286_v56, %v285_v55 }
 0x1b4   :  { %v295_v60 = vsel %vm165_vm2, %v284_v57, 0.0 }
 0x1b5   :  { %v288_v61 = vrot.slane %v287_v59, 4  ;;  %v296_v62 = vadd.f32 %v295_v60, %v294_v58 }
 0x1b7   :  { %v289_v63 = vadd.f32 %v288_v61, %v287_v59  ;;  %v297_v0 = vrot.slane %v296_v62, 4 }
 0x1b9   :  { %v290_v1 = vrot.slane %v289_v63, 2  ;;  %v298_v2 = vadd.f32 %v297_v0, %v296_v62 }
 0x1bb   :  { %v291_v3 = vadd.f32 %v290_v1, %v289_v63  ;;  %v299_v4 = vrot.slane %v298_v2, 2 }
 0x1bd   :  { %v292_v5 = vrot.slane %v291_v3, 1  ;;  %v300_v6 = vadd.f32 %v299_v4, %v298_v2 }
 0x1bf   :  { %v293_v7 = vadd.f32 %v292_v5, %v291_v3  ;;  %v301_v8 = vrot.slane %v300_v6, 1 }
 0x1c1   :  { %v303_v9 = vsub.f32 0.0, %v293_v7  ;;  %v302_v10 = vadd.f32 %v301_v8, %v300_v6 }
 0x1c3   :  { %v305_v11 = vmul.f32 1.442695, %v303_v9  ;;  %v304_v12 = vsub.f32 0.0, %v302_v10 }
 0x1c5   :  { %371 = vpow2.f32 %v305_v11  ;;  %v307_v13 = vmul.f32 1.442695, %v304_v12 }
 0x1c7   :  { %373 = vpow2.f32 %v307_v13 }
 0x1d2   :  { %v372_v14 = vpop.eup %371 }
 0x1d3   :  { %v309_v15 = vadd.f32 1.0, %v372_v14 }
 0x1d4   :  { %v374_v16 = vpop.eup %373 }
 0x1d5   :  { %v310_v17 = vadd.f32 1.0, %v374_v16  ;;  %375 = vrcp.f32 %v309_v15 }
 0x1d7   :  { %377 = vrcp.f32 %v310_v17 }
 0x1e2   :  { %v376_v23 = vpop.eup %375 }
 0x1e4   :  { %v378_v25 = vpop.eup %377 }
 0x1e5   :  { %v317_v26 = vcombine.low %v376_v23, %v378_v25 }
 0x1e7   :  { %v324_v27 = vrot.slane %v317_v26, %v323_v24 }
 0x1e9   :  { %v331_v28 = vrot.slane %v324_v27, %v323_v24 }
 0x1eb   :  { %337 = vst.msk [vmem:[#allocation2] sm:$0x3] %vm335_vm4, %v331_v28 }
 0x1ec   :  { %390 = shalt.err (!%p387_p4)
}
 0x1ed   :  { %347 = dma.vmem_to_hbm [thread:$0]  %s345_s10, 32, %s490_s4, [#allocation3]  }
 0x1ee   :  { %399 = dma.done.wait [#allocation3], 32  }
 0x1ef   :  { %400 = vsyncadd [#allocation3], 4294967264 }
 0x1f0   :  { %351 = vsyncpa [#allocation3], 1 }

</bundles_post_ra>
